<compile_context>
chip_gen: v7x
topology: tpu7x:2x2x1
jax: 0.10.0
libtpu: 0.0.40
codegen_flags: <defaults>
</compile_context>

<pallas_src>
import jax
import jax.numpy as jnp
from jax import lax
from jax.experimental import pallas as pl
from jax.experimental.pallas import tpu as pltpu


def _lstm_kernel(x_ref, wih_ref, whh_ref, b_ref, wfc_ref, bfc_ref, out_ref):
    TB, I = x_ref.shape          # time-major rows: (T*B, I)
    H, H4 = whh_ref.shape        # fused recurrent panel: (H, 4H)
    B, O = out_ref.shape
    T = TB // B

    # ---- Phase 1: hoisted input projection (one lane-dense matmul, M=T*B, N=4H) ----
    gx = (jnp.dot(x_ref[...], wih_ref[...], preferred_element_type=jnp.float32)
          + b_ref[...])                                        # (T*B, 4H), time-major

    whh = whh_ref[...]                                         # (H, 4H) fused [i|f|g|o]

    # Lane-index mask selecting the g-gate block [2H, 3H) for the tanh overwrite.
    lane = lax.broadcasted_iota(jnp.int32, (B, H4), 1)
    g_mask = (lane >= 2 * H) & (lane < 3 * H)

    h = jnp.zeros((B, H), jnp.float32)
    c = jnp.zeros((B, H), jnp.float32)

    # ---- Phase 2: serial recurrence, one fused matmul + full-width activations per step ----
    for t in range(T):
        gates = gx[t * B:(t + 1) * B, :] + jnp.dot(
            h, whh, preferred_element_type=jnp.float32)        # (B, 4H) lane-dense
        act = jnp.where(g_mask, jnp.tanh(gates), jax.nn.sigmoid(gates))
        i_g = act[:, 0 * H:1 * H]
        f_g = act[:, 1 * H:2 * H]
        g_g = act[:, 2 * H:3 * H]
        o_g = act[:, 3 * H:4 * H]
        c = f_g * c + i_g * g_g
        h = o_g * jnp.tanh(c)

    # ---- Phase 3: final FC as VPU multiply + lane reduction (skip the N=1 MXU trip) ----
    fc = jnp.sum(h[:, None, :] * wfc_ref[...][None, :, :], axis=-1) + bfc_ref[...]
    out_ref[...] = fc.astype(out_ref.dtype)                    # (B, O)


def simple_lstm_forward(x, params):
    """x: (B, T, I) float32, batch_first like PyTorch. Returns (B, output_size) f32."""
    wih, whh, b_ih, b_hh, wfc, bfc = (params["w_ih"], params["w_hh"],
                                      params["b_ih"], params["b_hh"],
                                      params["w_fc"], params["b_fc"])
    B, T, I = x.shape
    H4 = wih.shape[0]
    H = H4 // 4
    O = wfc.shape[0]

    # One-time (tiny) re-layouts; gate order stays PyTorch's [i, f, g, o].
    x_tm = jnp.transpose(x, (1, 0, 2)).reshape(T * B, I)       # time-major rows
    wih_t = wih.T                                              # (I, 4H)
    whh_t = whh.T                                              # (H, 4H) fused lane-dense
    bias = (b_ih + b_hh).reshape(1, 4 * H)                     # (1, 4H)
    bfc_r = bfc.reshape(1, O)                                  # (1, O)

    vmem = pltpu.MemorySpace.VMEM
    out = pl.pallas_call(
        _lstm_kernel,
        out_shape=jax.ShapeDtypeStruct((B, O), jnp.float32),
        in_specs=[
            pl.BlockSpec(memory_space=vmem),   # x, time-major (T*B, I)
            pl.BlockSpec(memory_space=vmem),   # W_ih^T (I, 4H)
            pl.BlockSpec(memory_space=vmem),   # W_hh^T (H, 4H) fused
            pl.BlockSpec(memory_space=vmem),   # b_ih + b_hh (1, 4H)
            pl.BlockSpec(memory_space=vmem),   # W_fc (O, H)
            pl.BlockSpec(memory_space=vmem),   # b_fc (1, O)
        ],
        out_specs=pl.BlockSpec(memory_space=vmem),
    )(x_tm, wih_t, whh_t, bias, wfc, bfc_r)
    return out


def _reference_forward(x, params):
    """Pure-JAX reference matching PyTorch nn.LSTM (batch_first) + nn.Linear."""
    wih, whh, b_ih, b_hh, wfc, bfc = (params["w_ih"], params["w_hh"],
                                      params["b_ih"], params["b_hh"],
                                      params["w_fc"], params["b_fc"])
    B, T, I = x.shape
    H = whh.shape[1]
    h = jnp.zeros((B, H), jnp.float32)
    c = jnp.zeros((B, H), jnp.float32)
    for t in range(T):
        g = x[:, t, :] @ wih.T + h @ whh.T + b_ih + b_hh
        i_g = jax.nn.sigmoid(g[:, 0 * H:1 * H])
        f_g = jax.nn.sigmoid(g[:, 1 * H:2 * H])
        g_g = jnp.tanh(g[:, 2 * H:3 * H])
        o_g = jax.nn.sigmoid(g[:, 3 * H:4 * H])
        c = f_g * c + i_g * g_g
        h = o_g * jnp.tanh(c)
    return h @ wfc.T + bfc


def make_params(key, input_size, hidden_size, output_size):
    ks = jax.random.split(key, 6)
    s = 0.1
    return {
        "w_ih": s * jax.random.normal(ks[0], (4 * hidden_size, input_size), jnp.float32),
        "w_hh": s * jax.random.normal(ks[1], (4 * hidden_size, hidden_size), jnp.float32),
        "b_ih": s * jax.random.normal(ks[2], (4 * hidden_size,), jnp.float32),
        "b_hh": s * jax.random.normal(ks[3], (4 * hidden_size,), jnp.float32),
        "w_fc": s * jax.random.normal(ks[4], (output_size, hidden_size), jnp.float32),
        "b_fc": s * jax.random.normal(ks[5], (output_size,), jnp.float32),
    }


if __name__ == "__main__":
    B, T, I, H, O = 2, 8, 4, 32, 1
    key = jax.random.PRNGKey(0)
    kx, kp = jax.random.split(key)
    x = jax.random.normal(kx, (B, T, I), jnp.float32)
    params = make_params(kp, I, H, O)

    out = simple_lstm_forward(x, params)
    out = jax.block_until_ready(out)

    ref = _reference_forward(x, params)
    assert out.shape == (B, O)
    assert jnp.allclose(out, ref, atol=1e-4, rtol=1e-4), (out, ref)

    print("KERNEL_OK")
</pallas_src>

<mosaic_0001>
module attributes {stable_mosaic.version = 11 : i64} {
  func.func @_lstm_kernel(%arg0: memref<16x4xf32, #tpu.memory_space<vmem>>, %arg1: memref<4x128xf32, #tpu.memory_space<vmem>>, %arg2: memref<32x128xf32, #tpu.memory_space<vmem>>, %arg3: memref<1x128xf32, #tpu.memory_space<vmem>>, %arg4: memref<1x32xf32, #tpu.memory_space<vmem>>, %arg5: memref<1x1xf32, #tpu.memory_space<vmem>>, %arg6: memref<2x1xf32, #tpu.memory_space<vmem>>) attributes {dimension_semantics = [], scalar_prefetch = 0 : i64, scratch_operands = 0 : i64, tpu.core_type = #tpu.core_type<tc>} {
    %c0 = arith.constant 0 : index
    %c0_0 = arith.constant 0 : index
    %0 = vector.load %arg0[%c0, %c0_0] : memref<16x4xf32, #tpu.memory_space<vmem>>, vector<16x4xf32>
    %c0_1 = arith.constant 0 : index
    %c0_2 = arith.constant 0 : index
    %1 = vector.load %arg1[%c0_1, %c0_2] : memref<4x128xf32, #tpu.memory_space<vmem>>, vector<4x128xf32>
    %cst = arith.constant dense<0.000000e+00> : vector<16x128xf32>
    %2 = tpu.matmul %0, %1, %cst {dimension_numbers = #tpu.dot_dimension_numbers<[1], [0], [0], [1], [0, 0, 1, 1], [], []>} : vector<16x4xf32>, vector<4x128xf32>, vector<16x128xf32> -> vector<16x128xf32>
    %c0_3 = arith.constant 0 : index
    %c0_4 = arith.constant 0 : index
    %3 = vector.load %arg3[%c0_3, %c0_4] : memref<1x128xf32, #tpu.memory_space<vmem>>, vector<1x128xf32>
    %4 = vector.broadcast %3 : vector<1x128xf32> to vector<16x128xf32>
    %5 = arith.addf %2, %4 : vector<16x128xf32>
    %c0_5 = arith.constant 0 : index
    %c0_6 = arith.constant 0 : index
    %6 = vector.load %arg2[%c0_5, %c0_6] : memref<32x128xf32, #tpu.memory_space<vmem>>, vector<32x128xf32>
    %7 = tpu.iota {dimensions = array<i32: 1>} : vector<2x128xi32>
    %c64_i32 = arith.constant 64 : i32
    %8 = vector.broadcast %c64_i32 : i32 to vector<2x128xi32>
    %9 = arith.cmpi sge, %7, %8 : vector<2x128xi32>
    %c96_i32 = arith.constant 96 : i32
    %10 = vector.broadcast %c96_i32 : i32 to vector<2x128xi32>
    %11 = arith.cmpi slt, %7, %10 : vector<2x128xi32>
    %12 = arith.andi %9, %11 : vector<2x128xi1>
    %cst_7 = arith.constant 0.000000e+00 : f32
    %13 = vector.broadcast %cst_7 : f32 to vector<2x32xf32>
    %cst_8 = arith.constant 0.000000e+00 : f32
    %14 = vector.broadcast %cst_8 : f32 to vector<2x32xf32>
    %15 = vector.extract_strided_slice %5 {offsets = [0, 0], sizes = [2, 128], strides = [1, 1]} : vector<16x128xf32> to vector<2x128xf32>
    %cst_9 = arith.constant dense<0.000000e+00> : vector<2x128xf32>
    %16 = tpu.matmul %13, %6, %cst_9 {dimension_numbers = #tpu.dot_dimension_numbers<[1], [0], [0], [1], [0, 0, 1, 1], [], []>} : vector<2x32xf32>, vector<32x128xf32>, vector<2x128xf32> -> vector<2x128xf32>
    %17 = arith.addf %15, %16 : vector<2x128xf32>
    %18 = math.tanh %17 : vector<2x128xf32>
    %19 = arith.negf %17 : vector<2x128xf32>
    %20 = math.exp %19 : vector<2x128xf32>
    %cst_10 = arith.constant 1.000000e+00 : f32
    %21 = vector.broadcast %cst_10 : f32 to vector<2x128xf32>
    %22 = arith.addf %21, %20 : vector<2x128xf32>
    %23 = arith.divf %21, %22 : vector<2x128xf32>
    %24 = arith.select %12, %18, %23 : vector<2x128xi1>, vector<2x128xf32>
    %25 = vector.extract_strided_slice %24 {offsets = [0, 0], sizes = [2, 32], strides = [1, 1]} : vector<2x128xf32> to vector<2x32xf32>
    %26 = vector.extract_strided_slice %24 {offsets = [0, 32], sizes = [2, 32], strides = [1, 1]} : vector<2x128xf32> to vector<2x32xf32>
    %27 = vector.extract_strided_slice %24 {offsets = [0, 64], sizes = [2, 32], strides = [1, 1]} : vector<2x128xf32> to vector<2x32xf32>
    %28 = vector.extract_strided_slice %24 {offsets = [0, 96], sizes = [2, 32], strides = [1, 1]} : vector<2x128xf32> to vector<2x32xf32>
    %29 = arith.mulf %26, %14 : vector<2x32xf32>
    %30 = arith.mulf %25, %27 : vector<2x32xf32>
    %31 = arith.addf %29, %30 : vector<2x32xf32>
    %32 = math.tanh %31 : vector<2x32xf32>
    %33 = arith.mulf %28, %32 : vector<2x32xf32>
    %34 = vector.extract_strided_slice %5 {offsets = [2, 0], sizes = [2, 128], strides = [1, 1]} : vector<16x128xf32> to vector<2x128xf32>
    %cst_11 = arith.constant dense<0.000000e+00> : vector<2x128xf32>
    %35 = tpu.matmul %33, %6, %cst_11 {dimension_numbers = #tpu.dot_dimension_numbers<[1], [0], [0], [1], [0, 0, 1, 1], [], []>} : vector<2x32xf32>, vector<32x128xf32>, vector<2x128xf32> -> vector<2x128xf32>
    %36 = arith.addf %34, %35 : vector<2x128xf32>
    %37 = math.tanh %36 : vector<2x128xf32>
    %38 = arith.negf %36 : vector<2x128xf32>
    %39 = math.exp %38 : vector<2x128xf32>
    %cst_12 = arith.constant 1.000000e+00 : f32
    %40 = vector.broadcast %cst_12 : f32 to vector<2x128xf32>
    %41 = arith.addf %40, %39 : vector<2x128xf32>
    %42 = arith.divf %40, %41 : vector<2x128xf32>
    %43 = arith.select %12, %37, %42 : vector<2x128xi1>, vector<2x128xf32>
    %44 = vector.extract_strided_slice %43 {offsets = [0, 0], sizes = [2, 32], strides = [1, 1]} : vector<2x128xf32> to vector<2x32xf32>
    %45 = vector.extract_strided_slice %43 {offsets = [0, 32], sizes = [2, 32], strides = [1, 1]} : vector<2x128xf32> to vector<2x32xf32>
    %46 = vector.extract_strided_slice %43 {offsets = [0, 64], sizes = [2, 32], strides = [1, 1]} : vector<2x128xf32> to vector<2x32xf32>
    %47 = vector.extract_strided_slice %43 {offsets = [0, 96], sizes = [2, 32], strides = [1, 1]} : vector<2x128xf32> to vector<2x32xf32>
    %48 = arith.mulf %45, %31 : vector<2x32xf32>
    %49 = arith.mulf %44, %46 : vector<2x32xf32>
    %50 = arith.addf %48, %49 : vector<2x32xf32>
    %51 = math.tanh %50 : vector<2x32xf32>
    %52 = arith.mulf %47, %51 : vector<2x32xf32>
    %53 = vector.extract_strided_slice %5 {offsets = [4, 0], sizes = [2, 128], strides = [1, 1]} : vector<16x128xf32> to vector<2x128xf32>
    %cst_13 = arith.constant dense<0.000000e+00> : vector<2x128xf32>
    %54 = tpu.matmul %52, %6, %cst_13 {dimension_numbers = #tpu.dot_dimension_numbers<[1], [0], [0], [1], [0, 0, 1, 1], [], []>} : vector<2x32xf32>, vector<32x128xf32>, vector<2x128xf32> -> vector<2x128xf32>
    %55 = arith.addf %53, %54 : vector<2x128xf32>
    %56 = math.tanh %55 : vector<2x128xf32>
    %57 = arith.negf %55 : vector<2x128xf32>
    %58 = math.exp %57 : vector<2x128xf32>
    %cst_14 = arith.constant 1.000000e+00 : f32
    %59 = vector.broadcast %cst_14 : f32 to vector<2x128xf32>
    %60 = arith.addf %59, %58 : vector<2x128xf32>
    %61 = arith.divf %59, %60 : vector<2x128xf32>
    %62 = arith.select %12, %56, %61 : vector<2x128xi1>, vector<2x128xf32>
    %63 = vector.extract_strided_slice %62 {offsets = [0, 0], sizes = [2, 32], strides = [1, 1]} : vector<2x128xf32> to vector<2x32xf32>
    %64 = vector.extract_strided_slice %62 {offsets = [0, 32], sizes = [2, 32], strides = [1, 1]} : vector<2x128xf32> to vector<2x32xf32>
    %65 = vector.extract_strided_slice %62 {offsets = [0, 64], sizes = [2, 32], strides = [1, 1]} : vector<2x128xf32> to vector<2x32xf32>
    %66 = vector.extract_strided_slice %62 {offsets = [0, 96], sizes = [2, 32], strides = [1, 1]} : vector<2x128xf32> to vector<2x32xf32>
    %67 = arith.mulf %64, %50 : vector<2x32xf32>
    %68 = arith.mulf %63, %65 : vector<2x32xf32>
    %69 = arith.addf %67, %68 : vector<2x32xf32>
    %70 = math.tanh %69 : vector<2x32xf32>
    %71 = arith.mulf %66, %70 : vector<2x32xf32>
    %72 = vector.extract_strided_slice %5 {offsets = [6, 0], sizes = [2, 128], strides = [1, 1]} : vector<16x128xf32> to vector<2x128xf32>
    %cst_15 = arith.constant dense<0.000000e+00> : vector<2x128xf32>
    %73 = tpu.matmul %71, %6, %cst_15 {dimension_numbers = #tpu.dot_dimension_numbers<[1], [0], [0], [1], [0, 0, 1, 1], [], []>} : vector<2x32xf32>, vector<32x128xf32>, vector<2x128xf32> -> vector<2x128xf32>
    %74 = arith.addf %72, %73 : vector<2x128xf32>
    %75 = math.tanh %74 : vector<2x128xf32>
    %76 = arith.negf %74 : vector<2x128xf32>
    %77 = math.exp %76 : vector<2x128xf32>
    %cst_16 = arith.constant 1.000000e+00 : f32
    %78 = vector.broadcast %cst_16 : f32 to vector<2x128xf32>
    %79 = arith.addf %78, %77 : vector<2x128xf32>
    %80 = arith.divf %78, %79 : vector<2x128xf32>
    %81 = arith.select %12, %75, %80 : vector<2x128xi1>, vector<2x128xf32>
    %82 = vector.extract_strided_slice %81 {offsets = [0, 0], sizes = [2, 32], strides = [1, 1]} : vector<2x128xf32> to vector<2x32xf32>
    %83 = vector.extract_strided_slice %81 {offsets = [0, 32], sizes = [2, 32], strides = [1, 1]} : vector<2x128xf32> to vector<2x32xf32>
    %84 = vector.extract_strided_slice %81 {offsets = [0, 64], sizes = [2, 32], strides = [1, 1]} : vector<2x128xf32> to vector<2x32xf32>
    %85 = vector.extract_strided_slice %81 {offsets = [0, 96], sizes = [2, 32], strides = [1, 1]} : vector<2x128xf32> to vector<2x32xf32>
    %86 = arith.mulf %83, %69 : vector<2x32xf32>
    %87 = arith.mulf %82, %84 : vector<2x32xf32>
    %88 = arith.addf %86, %87 : vector<2x32xf32>
    %89 = math.tanh %88 : vector<2x32xf32>
    %90 = arith.mulf %85, %89 : vector<2x32xf32>
    %91 = vector.extract_strided_slice %5 {offsets = [8, 0], sizes = [2, 128], strides = [1, 1]} : vector<16x128xf32> to vector<2x128xf32>
    %cst_17 = arith.constant dense<0.000000e+00> : vector<2x128xf32>
    %92 = tpu.matmul %90, %6, %cst_17 {dimension_numbers = #tpu.dot_dimension_numbers<[1], [0], [0], [1], [0, 0, 1, 1], [], []>} : vector<2x32xf32>, vector<32x128xf32>, vector<2x128xf32> -> vector<2x128xf32>
    %93 = arith.addf %91, %92 : vector<2x128xf32>
    %94 = math.tanh %93 : vector<2x128xf32>
    %95 = arith.negf %93 : vector<2x128xf32>
    %96 = math.exp %95 : vector<2x128xf32>
    %cst_18 = arith.constant 1.000000e+00 : f32
    %97 = vector.broadcast %cst_18 : f32 to vector<2x128xf32>
    %98 = arith.addf %97, %96 : vector<2x128xf32>
    %99 = arith.divf %97, %98 : vector<2x128xf32>
    %100 = arith.select %12, %94, %99 : vector<2x128xi1>, vector<2x128xf32>
    %101 = vector.extract_strided_slice %100 {offsets = [0, 0], sizes = [2, 32], strides = [1, 1]} : vector<2x128xf32> to vector<2x32xf32>
    %102 = vector.extract_strided_slice %100 {offsets = [0, 32], sizes = [2, 32], strides = [1, 1]} : vector<2x128xf32> to vector<2x32xf32>
    %103 = vector.extract_strided_slice %100 {offsets = [0, 64], sizes = [2, 32], strides = [1, 1]} : vector<2x128xf32> to vector<2x32xf32>
    %104 = vector.extract_strided_slice %100 {offsets = [0, 96], sizes = [2, 32], strides = [1, 1]} : vector<2x128xf32> to vector<2x32xf32>
    %105 = arith.mulf %102, %88 : vector<2x32xf32>
    %106 = arith.mulf %101, %103 : vector<2x32xf32>
    %107 = arith.addf %105, %106 : vector<2x32xf32>
    %108 = math.tanh %107 : vector<2x32xf32>
    %109 = arith.mulf %104, %108 : vector<2x32xf32>
    %110 = vector.extract_strided_slice %5 {offsets = [10, 0], sizes = [2, 128], strides = [1, 1]} : vector<16x128xf32> to vector<2x128xf32>
    %cst_19 = arith.constant dense<0.000000e+00> : vector<2x128xf32>
    %111 = tpu.matmul %109, %6, %cst_19 {dimension_numbers = #tpu.dot_dimension_numbers<[1], [0], [0], [1], [0, 0, 1, 1], [], []>} : vector<2x32xf32>, vector<32x128xf32>, vector<2x128xf32> -> vector<2x128xf32>
    %112 = arith.addf %110, %111 : vector<2x128xf32>
    %113 = math.tanh %112 : vector<2x128xf32>
    %114 = arith.negf %112 : vector<2x128xf32>
    %115 = math.exp %114 : vector<2x128xf32>
    %cst_20 = arith.constant 1.000000e+00 : f32
    %116 = vector.broadcast %cst_20 : f32 to vector<2x128xf32>
    %117 = arith.addf %116, %115 : vector<2x128xf32>
    %118 = arith.divf %116, %117 : vector<2x128xf32>
    %119 = arith.select %12, %113, %118 : vector<2x128xi1>, vector<2x128xf32>
    %120 = vector.extract_strided_slice %119 {offsets = [0, 0], sizes = [2, 32], strides = [1, 1]} : vector<2x128xf32> to vector<2x32xf32>
    %121 = vector.extract_strided_slice %119 {offsets = [0, 32], sizes = [2, 32], strides = [1, 1]} : vector<2x128xf32> to vector<2x32xf32>
    %122 = vector.extract_strided_slice %119 {offsets = [0, 64], sizes = [2, 32], strides = [1, 1]} : vector<2x128xf32> to vector<2x32xf32>
    %123 = vector.extract_strided_slice %119 {offsets = [0, 96], sizes = [2, 32], strides = [1, 1]} : vector<2x128xf32> to vector<2x32xf32>
    %124 = arith.mulf %121, %107 : vector<2x32xf32>
    %125 = arith.mulf %120, %122 : vector<2x32xf32>
    %126 = arith.addf %124, %125 : vector<2x32xf32>
    %127 = math.tanh %126 : vector<2x32xf32>
    %128 = arith.mulf %123, %127 : vector<2x32xf32>
    %129 = vector.extract_strided_slice %5 {offsets = [12, 0], sizes = [2, 128], strides = [1, 1]} : vector<16x128xf32> to vector<2x128xf32>
    %cst_21 = arith.constant dense<0.000000e+00> : vector<2x128xf32>
    %130 = tpu.matmul %128, %6, %cst_21 {dimension_numbers = #tpu.dot_dimension_numbers<[1], [0], [0], [1], [0, 0, 1, 1], [], []>} : vector<2x32xf32>, vector<32x128xf32>, vector<2x128xf32> -> vector<2x128xf32>
    %131 = arith.addf %129, %130 : vector<2x128xf32>
    %132 = math.tanh %131 : vector<2x128xf32>
    %133 = arith.negf %131 : vector<2x128xf32>
    %134 = math.exp %133 : vector<2x128xf32>
    %cst_22 = arith.constant 1.000000e+00 : f32
    %135 = vector.broadcast %cst_22 : f32 to vector<2x128xf32>
    %136 = arith.addf %135, %134 : vector<2x128xf32>
    %137 = arith.divf %135, %136 : vector<2x128xf32>
    %138 = arith.select %12, %132, %137 : vector<2x128xi1>, vector<2x128xf32>
    %139 = vector.extract_strided_slice %138 {offsets = [0, 0], sizes = [2, 32], strides = [1, 1]} : vector<2x128xf32> to vector<2x32xf32>
    %140 = vector.extract_strided_slice %138 {offsets = [0, 32], sizes = [2, 32], strides = [1, 1]} : vector<2x128xf32> to vector<2x32xf32>
    %141 = vector.extract_strided_slice %138 {offsets = [0, 64], sizes = [2, 32], strides = [1, 1]} : vector<2x128xf32> to vector<2x32xf32>
    %142 = vector.extract_strided_slice %138 {offsets = [0, 96], sizes = [2, 32], strides = [1, 1]} : vector<2x128xf32> to vector<2x32xf32>
    %143 = arith.mulf %140, %126 : vector<2x32xf32>
    %144 = arith.mulf %139, %141 : vector<2x32xf32>
    %145 = arith.addf %143, %144 : vector<2x32xf32>
    %146 = math.tanh %145 : vector<2x32xf32>
    %147 = arith.mulf %142, %146 : vector<2x32xf32>
    %148 = vector.extract_strided_slice %5 {offsets = [14, 0], sizes = [2, 128], strides = [1, 1]} : vector<16x128xf32> to vector<2x128xf32>
    %cst_23 = arith.constant dense<0.000000e+00> : vector<2x128xf32>
    %149 = tpu.matmul %147, %6, %cst_23 {dimension_numbers = #tpu.dot_dimension_numbers<[1], [0], [0], [1], [0, 0, 1, 1], [], []>} : vector<2x32xf32>, vector<32x128xf32>, vector<2x128xf32> -> vector<2x128xf32>
    %150 = arith.addf %148, %149 : vector<2x128xf32>
    %151 = math.tanh %150 : vector<2x128xf32>
    %152 = arith.negf %150 : vector<2x128xf32>
    %153 = math.exp %152 : vector<2x128xf32>
    %cst_24 = arith.constant 1.000000e+00 : f32
    %154 = vector.broadcast %cst_24 : f32 to vector<2x128xf32>
    %155 = arith.addf %154, %153 : vector<2x128xf32>
    %156 = arith.divf %154, %155 : vector<2x128xf32>
    %157 = arith.select %12, %151, %156 : vector<2x128xi1>, vector<2x128xf32>
    %158 = vector.extract_strided_slice %157 {offsets = [0, 0], sizes = [2, 32], strides = [1, 1]} : vector<2x128xf32> to vector<2x32xf32>
    %159 = vector.extract_strided_slice %157 {offsets = [0, 32], sizes = [2, 32], strides = [1, 1]} : vector<2x128xf32> to vector<2x32xf32>
    %160 = vector.extract_strided_slice %157 {offsets = [0, 64], sizes = [2, 32], strides = [1, 1]} : vector<2x128xf32> to vector<2x32xf32>
    %161 = vector.extract_strided_slice %157 {offsets = [0, 96], sizes = [2, 32], strides = [1, 1]} : vector<2x128xf32> to vector<2x32xf32>
    %162 = arith.mulf %159, %145 : vector<2x32xf32>
    %163 = arith.mulf %158, %160 : vector<2x32xf32>
    %164 = arith.addf %162, %163 : vector<2x32xf32>
    %165 = math.tanh %164 : vector<2x32xf32>
    %166 = arith.mulf %161, %165 : vector<2x32xf32>
    %167 = vector.shape_cast %166 : vector<2x32xf32> to vector<2x1x32xf32>
    %c0_25 = arith.constant 0 : index
    %c0_26 = arith.constant 0 : index
    %168 = vector.load %arg4[%c0_25, %c0_26] : memref<1x32xf32, #tpu.memory_space<vmem>>, vector<1x32xf32>
    %169 = vector.shape_cast %168 : vector<1x32xf32> to vector<1x1x32xf32>
    %170 = vector.broadcast %169 : vector<1x1x32xf32> to vector<2x1x32xf32>
    %171 = arith.mulf %167, %170 : vector<2x1x32xf32>
    %cst_27 = arith.constant dense<0.000000e+00> : vector<2x1xf32>
    %172 = vector.multi_reduction <add>, %171, %cst_27 [2] : vector<2x1x32xf32> to vector<2x1xf32>
    %c0_28 = arith.constant 0 : index
    %c0_29 = arith.constant 0 : index
    %173 = vector.load %arg5[%c0_28, %c0_29] : memref<1x1xf32, #tpu.memory_space<vmem>>, vector<1x1xf32>
    %174 = vector.broadcast %173 : vector<1x1xf32> to vector<2x1xf32>
    %175 = arith.addf %172, %174 : vector<2x1xf32>
    %c0_30 = arith.constant 0 : index
    %c0_31 = arith.constant 0 : index
    %176 = vector.load %arg6[%c0_30, %c0_31] : memref<2x1xf32, #tpu.memory_space<vmem>>, vector<2x1xf32>
    tpu.vector_store %arg6[%c0_30, %c0_31], %175 {strides = array<i32>} : memref<2x1xf32, #tpu.memory_space<vmem>>, vector<2x1xf32>,
    return
  }
}

</mosaic_0001>

<bundles_post_ra>
// kernel: tpu_custom_call.1
= control target key start
LH: loop header
LB: loop body
LE: loop exit
PB: predicated region body
PF: predicated region fallthrough
CT: control target
= control target key end

     0   :  { %s1585_s0 = inlined_call_operand.vmem [shape: f32[16,4], index: 0, kind: input, shape index: {}]   ;;  %s1586_s1 = inlined_call_operand.vmem [shape: f32[4,128], index: 1, kind: input, shape index: {}]   ;;  %s1587_s2 = inlined_call_operand.hbm [shape: f32[32,128], index: 2, kind: input, shape index: {}]   ;;  %s1588_s3 = inlined_call_operand.vmem [shape: f32[1,128], index: 3, kind: input, shape index: {}]   ;;  %s1589_s4 = inlined_call_operand.vmem [shape: f32[1,32], index: 4, kind: input, shape index: {}]   ;;  %s1590_s5 = inlined_call_operand.<no memory space> [shape: f32[1,1], index: 5, kind: input, shape index: {}]   ;;  %s1591_s6 = inlined_call_operand.vmem [shape: f32[2,1], index: 6, kind: output, shape index: {}]  }
   0x1   :  { %v11_v0 = vstv %s1590_s5 }
   0x2   :  { %12 = vst [vmem:[#allocation2] sm:$0x1] %v11_v0 }
   0x3   :  { %13 = vsyncpa [#allocation4], 0  ;;  %s1380_s23 = smov [#allocation3]   ;;  %s1356_s27 = scalar_lea.hbm %s1587_s2, 512 }
   0x4   :  { %s23_s24 = sshll.u32 %s1380_s23, 4  ;;  %p1357_p0 = scmp.ne.s32.totalorder %s1587_s2, %s1356_s27  ;;  %s24_s24 = int_to_ptr.vmem [resolvable:$true] %s23_s24 }
   0x5   :  { %p1360_p1 = scmp.lt.u32.totalorder %s1356_s27, %s1587_s2 }
   0x7   :  { %p1362_p2 = pnand %p1360_p1, %p1357_p0 }
   0x9   :  { %1365 = shalt.err (!%p1362_p2)
}
   0xa   :  { %s1366_s5 = scalar_lea.vmem %s24_s24, 512  ;;  %p1371_p4 = scmp.lt.s32.totalorder %s24_s24, %s24_s24 }
   0xb   :  { %p1367_p3 = scmp.ne.s32.totalorder %s24_s24, %s1366_s5  ;;  %p1372_p5 = scmp.lt.s32.totalorder %s1366_s5, %s1366_s5 }
   0xd   :  { %p1373_p6 = por %p1372_p5, %p1371_p4 }
   0xf   :  { %p1374_p7 = pnand %p1373_p6, %p1367_p3 }
  0x11   :  { %1377 = shalt.err (!%p1374_p7)
}
  0x12   :  { %s1381_s8 = smov 128   ;;  %s1382_s9 = smov 8  }
  0x13   :  { %29 = dma.hbm_to_vmem [thread:$0]  %s1587_s2, 512, %s24_s24, [#allocation4], %s1381_s8, %s1381_s8, %s1382_s9  }
  0x14   :  { %1378 = dma.done.wait [#allocation4], 512  }
  0x15   :  { %1379 = vsyncadd [#allocation4], 4294966784  ;;  %v1383_v1 = vmov 0.0|0.0   ;;  %vm1384_vm0 = vmmov 0   ;;  %v1385_v2 = vmov 0.0   ;;  %vm56_vm1 = vcmask 1043456  }
  0x16   :  { %1234 = vmatprep.subr.bf16.mxu1 %v1383_v1  ;;  %1154 = vmatprep.mubr.msk.f32.mxu1 %vm1384_vm0, %v1385_v2  ;;  %vm49_vm2 = vcmask 31744   ;;  %v135_v3 = vld [vmem:[#allocation3] sm:$0xff]  ;;  %v136_v4 = vld [vmem:[#allocation3 + $0x8] sm:$0xff]  ;;  %v137_v9 = vld [vmem:[#allocation3 + $0x10] sm:$0xff]  ;;  %v139_v22 = vlaneseq  ;;  %s1387_s17 = smov 32   ;;  %vm144_vm6 = vcmask 261120  }
  0x17   :  { %v41_v5 = vld [vmem:[%s1586_s1] sm:$0xf]  ;;  %v1446_v6 = vpack.c.bf16 %v136_v4, %v135_v3  ;;  %v40_v8 = vld [vmem:[%s1585_s0 + $0x8] sm:$0xff]  ;;  %s1388_s20 = smov 96   ;;  %v1389_v25 = vmov 1966171168  }
  0x18   :  { %1141 = vmatprep.subr.msk.mxu0 %vm56_vm1, %v41_v5  ;;  %v39_v7 = vld [vmem:[%s1585_s0] sm:$0xff]  ;;  %v140_v24 = vand.u32 127, %v139_v22  ;;  %vm1046_vm7 = vcmask 253952   ;;  %vm1068_vm8 = vcmask 1041409   ;;  %vm1071_vm9 = vcmask 1024  }
  0x19   :  { %1142 = vmatpush3.msk.msra.mxu0 %vm56_vm1, %v41_v5  ;;  %1143 = vmatprep.mubr.msk.f32.mxu0 %vm49_vm2, %v39_v7  ;;  %v138_v10 = vld [vmem:[#allocation3 + $0x18] sm:$0xff] }
  0x1a   :  { %1236 = vmatpush3.bf16.msra.mxu1 %v1446_v6  ;;  %1144 = vmatmul.mubr.msk.f32.vlgmr.msra.gmra.mrb[0].mxu0 %vm49_vm2, %v40_v8  ;;  %v1455_v11 = vpack.c.bf16 %v138_v10, %v137_v9  ;;  %v1078_v12 = vld [vmem:[%s1588_s3] ss:$0 sm:$0xff]  ;;  %vm141_vm3 = vcmp.ge.s32.totalorder %v140_v24, 64  ;;  %vm142_vm4 = vcmp.lt.s32.totalorder %v140_v24, 96  ;;  %s1386_s3 = smov 64  }
  0x1b   :  { %1237 = vmatprep.subr.bf16.mxu1 %v1383_v1  ;;  %1240 = vmatprep.subr.bf16.mxu0 %v1383_v1  ;;  %vm1483_vm5 = vmand %vm141_vm3, %vm142_vm4 }
  0x1c   :  { %1242 = vmatpush3.bf16.msra.mxu0 %v1446_v6  ;;  %1165 = vmatprep.mubr.msk.f32.mxu0 %vm1384_vm0, %v1385_v2 }
  0x1d   :  { %1243 = vmatprep.subr.bf16.mxu0 %v1383_v1 }
  0x1e   :  { %1239 = vmatpush3.bf16.msra.mxu1 %v1455_v11 }
  0x1f   :  { %1246 = vmatprep.subr.bf16.mxu1 %v1383_v1 }
  0x20   :  { %1245 = vmatpush3.bf16.msra.mxu0 %v1455_v11 }
  0x21   :  { %1155 = vmatmul.mubr.f32.vlgmr.msra.gmra.mrb[0].mxu1 %v1385_v2  ;;  %1252 = vmatprep.subr.bf16.mxu0 %v1383_v1 }
  0x22   :  { %1248 = vmatpush3.bf16.msra.mxu1 %v1446_v6  ;;  %1176 = vmatprep.mubr.msk.f32.mxu1 %vm1384_vm0, %v1385_v2 }
  0x23   :  { %1249 = vmatprep.subr.bf16.mxu1 %v1383_v1 }
  0x26   :  { %1251 = vmatpush3.bf16.msra.mxu1 %v1455_v11 }
  0x27   :  { %1258 = vmatprep.subr.bf16.mxu1 %v1383_v1 }
  0xed   :  { %v1145_v13 = vpop.f32.mrb[0].mxu0 }
  0xee   :  { %v1477_v14 = vadd.f32 %v1145_v13, %v1078_v12  ;;  %v126_v15 = vpop.f32.mrb[1].mxu0 }
  0xef   :  { %v1479_v16 = vadd.f32 %v1078_v12, %v126_v15 }
  0xf4   :  { %v214_v17 = vpop.f32.mrb[0].mxu1 }
  0xf5   :  { %v218_v18 = vadd.f32 %v214_v17, %v1479_v16  ;;  %v1156_v19 = vpop.f32.mrb[1].mxu1 }
  0xf7   :  { %v1082_v20 = vmul.f32 -1.442695, %v218_v18 }
  0xf9   :  { %1292 = vpow2.f32 %v1082_v20 }
  0xfa   :  { %1294 = vtanh.f32 %v218_v18 }
 0x103   :  { %v1293_v21 = vpop.eup %1292 }
 0x104   :  { %v223_v23 = vadd.f32 1.0, %v1293_v21  ;;  %v1295_v26 = vpop.eup %1294 }
 0x106   :  { %1296 = vrcp.f32 %v223_v23 }
 0x110   :  { %v1297_v27 = vpop.eup %1296 }
 0x111   :  { %v226_v28 = vsel %vm1483_vm5, %v1295_v26, %v1297_v27 }
 0x112   :  { %229 = vrot.lane.b32.xlu0 %v226_v28, %s1386_s3  ;;  %v227_v31 = vmul.f32 0.0, %v226_v28 }
 0x184   :  { %v230_v29 = vpop.permute.xlu0 %229 }
 0x185   :  { %v232_v30 = vmul.f32 %v230_v29, %v226_v28 }
 0x187   :  { %234 = vrot.lane.b32.xlu0 %v232_v30, %s1387_s17 }
 0x1f9   :  { %v235_v32 = vpop.permute.xlu0 %234 }
 0x1fa   :  { %v237_v33 = vadd.f32 %v235_v32, %v227_v31 }
 0x1fc   :  { %1298 = vtanh.f32 %v237_v33  ;;  %v332_v50 = vrot.slane %v237_v33, 6 }
 0x206   :  { %v1299_v34 = vpop.eup %1298 }
 0x207   :  { %240 = vrot.lane.b32.xlu1 %v1299_v34, %s1386_s3 }
 0x279   :  { %v241_v35 = vpop.permute.xlu1 %240 }
 0x27a   :  { %v243_v36 = vmul.f32 %v241_v35, %v226_v28 }
 0x27c   :  { %245 = vrot.lane.b32.xlu1 %v243_v36, %s1387_s17 }
 0x2ee   :  { %v246_v37 = vpop.permute.xlu1 %245 }
 0x2ef   :  { %1166 = vmatmul.mubr.msk.f32.vlgmr.msra.gmra.mrb[2].mxu0 %vm144_vm6, %v246_v37 }
 0x2f0   :  { %1254 = vmatpush3.bf16.msra.mxu0 %v1446_v6  ;;  %1187 = vmatprep.mubr.msk.f32.mxu0 %vm1384_vm0, %v1385_v2 }
 0x2f1   :  { %1255 = vmatprep.subr.bf16.mxu0 %v1383_v1 }
 0x2f4   :  { %1257 = vmatpush3.bf16.msra.mxu0 %v1455_v11 }
 0x2f5   :  { %1264 = vmatprep.subr.bf16.mxu0 %v1383_v1 }
 0x3c2   :  { %v315_v38 = vpop.f32.mrb[2].mxu0 }
 0x3c3   :  { %v320_v39 = vrot.slane %v315_v38, 6  ;;  %v1167_v40 = vpop.f32.mrb[3].mxu0 }
 0x3c5   :  { %v322_v41 = vadd.f32 %v320_v39, %v1479_v16 }
 0x3c7   :  { %v1084_v42 = vmul.f32 -1.442695, %v322_v41 }
 0x3c9   :  { %1300 = vpow2.f32 %v1084_v42 }
 0x3ca   :  { %1302 = vtanh.f32 %v322_v41 }
 0x3d3   :  { %v1301_v43 = vpop.eup %1300 }
 0x3d4   :  { %v327_v44 = vadd.f32 1.0, %v1301_v43  ;;  %v1303_v45 = vpop.eup %1302 }
 0x3d6   :  { %1304 = vrcp.f32 %v327_v44 }
 0x3e0   :  { %v1305_v46 = vpop.eup %1304 }
 0x3e1   :  { %v330_v47 = vsel %vm1483_vm5, %v1303_v45, %v1305_v46 }
 0x3e2   :  { %336 = vrot.lane.b32.xlu0 %v330_v47, %s1386_s3  ;;  %v334_v51 = vmul.f32 %v332_v50, %v330_v47 }
 0x454   :  { %v337_v48 = vpop.permute.xlu0 %336 }
 0x455   :  { %v339_v49 = vmul.f32 %v337_v48, %v330_v47 }
 0x457   :  { %341 = vrot.lane.b32.xlu1 %v339_v49, %s1387_s17 }
 0x4c9   :  { %v342_v52 = vpop.permute.xlu1 %341 }
 0x4ca   :  { %v344_v53 = vadd.f32 %v342_v52, %v334_v51 }
 0x4cc   :  { %1306 = vtanh.f32 %v344_v53  ;;  %v440_v10 = vrot.slane %v344_v53, 6 }
 0x4d6   :  { %v1307_v54 = vpop.eup %1306 }
 0x4d7   :  { %347 = vrot.lane.b32.xlu0 %v1307_v54, %s1386_s3 }
 0x549   :  { %v348_v55 = vpop.permute.xlu0 %347 }
 0x54a   :  { %v350_v56 = vmul.f32 %v348_v55, %v330_v47 }
 0x54c   :  { %v352_v57 = vrot.slane %v350_v56, 2 }
 0x54e   :  { %353 = vrot.lane.b32.xlu1 %v352_v57, %s1387_s17 }
 0x5c0   :  { %v354_v58 = vpop.permute.xlu1 %353 }
 0x5c1   :  { %1177 = vmatmul.mubr.msk.f32.vlgmr.msra.gmra.mrb[2].mxu1 %vm144_vm6, %v354_v58 }
 0x5c2   :  { %1260 = vmatpush3.bf16.msra.mxu1 %v1446_v6  ;;  %1198 = vmatprep.mubr.msk.f32.mxu1 %vm1384_vm0, %v1385_v2 }
 0x5c3   :  { %1261 = vmatprep.subr.bf16.mxu1 %v1383_v1 }
 0x5c6   :  { %1263 = vmatpush3.bf16.msra.mxu1 %v1455_v11 }
 0x5c7   :  { %1270 = vmatprep.subr.bf16.mxu1 %v1383_v1 }
 0x694   :  { %v423_v59 = vpop.f32.mrb[2].mxu1 }
 0x695   :  { %v428_v60 = vrot.slane %v423_v59, 4  ;;  %v1178_v61 = vpop.f32.mrb[3].mxu1 }
 0x697   :  { %v430_v62 = vadd.f32 %v428_v60, %v1479_v16 }
 0x699   :  { %v1086_v63 = vmul.f32 -1.442695, %v430_v62 }
 0x69b   :  { %1308 = vpow2.f32 %v1086_v63 }
 0x69c   :  { %1310 = vtanh.f32 %v430_v62 }
 0x6a5   :  { %v1309_v0 = vpop.eup %1308 }
 0x6a6   :  { %v435_v3 = vadd.f32 1.0, %v1309_v0  ;;  %v1311_v4 = vpop.eup %1310 }
 0x6a8   :  { %1312 = vrcp.f32 %v435_v3 }
 0x6b2   :  { %v1313_v5 = vpop.eup %1312 }
 0x6b3   :  { %v438_v7 = vsel %vm1483_vm5, %v1311_v4, %v1313_v5 }
 0x6b4   :  { %444 = vrot.lane.b32.xlu0 %v438_v7, %s1386_s3  ;;  %v442_v12 = vmul.f32 %v440_v10, %v438_v7 }
 0x726   :  { %v445_v8 = vpop.permute.xlu0 %444 }
 0x727   :  { %v447_v9 = vmul.f32 %v445_v8, %v438_v7 }
 0x729   :  { %449 = vrot.lane.b32.xlu1 %v447_v9, %s1387_s17 }
 0x79b   :  { %v450_v13 = vpop.permute.xlu1 %449 }
 0x79c   :  { %v452_v15 = vadd.f32 %v450_v13, %v442_v12 }
 0x79e   :  { %1314 = vtanh.f32 %v452_v15  ;;  %v548_v36 = vrot.slane %v452_v15, 6 }
 0x7a8   :  { %v1315_v17 = vpop.eup %1314 }
 0x7a9   :  { %455 = vrot.lane.b32.xlu0 %v1315_v17, %s1386_s3 }
 0x81b   :  { %v456_v18 = vpop.permute.xlu0 %455 }
 0x81c   :  { %v458_v19 = vmul.f32 %v456_v18, %v438_v7 }
 0x81e   :  { %v460_v20 = vrot.slane %v458_v19, 4 }
 0x820   :  { %461 = vrot.lane.b32.xlu1 %v460_v20, %s1387_s17 }
 0x892   :  { %v462_v21 = vpop.permute.xlu1 %461 }
 0x893   :  { %1188 = vmatmul.mubr.msk.f32.vlgmr.msra.gmra.mrb[4].mxu0 %vm144_vm6, %v462_v21 }
 0x894   :  { %1266 = vmatpush3.bf16.msra.mxu0 %v1446_v6  ;;  %1209 = vmatprep.mubr.msk.f32.mxu0 %vm1384_vm0, %v1385_v2 }
 0x895   :  { %1267 = vmatprep.subr.bf16.mxu0 %v1383_v1 }
 0x898   :  { %1269 = vmatpush3.bf16.msra.mxu0 %v1455_v11 }
 0x899   :  { %1276 = vmatprep.subr.bf16.mxu0 %v1383_v1 }
 0x966   :  { %v531_v23 = vpop.f32.mrb[4].mxu0 }
 0x967   :  { %v536_v24 = vrot.slane %v531_v23, 2  ;;  %v1189_v26 = vpop.f32.mrb[5].mxu0 }
 0x969   :  { %v538_v27 = vadd.f32 %v536_v24, %v1479_v16 }
 0x96b   :  { %v1088_v28 = vmul.f32 -1.442695, %v538_v27 }
 0x96d   :  { %1316 = vpow2.f32 %v1088_v28 }
 0x96e   :  { %1318 = vtanh.f32 %v538_v27 }
 0x977   :  { %v1317_v29 = vpop.eup %1316 }
 0x978   :  { %v543_v30 = vadd.f32 1.0, %v1317_v29  ;;  %v1319_v31 = vpop.eup %1318 }
 0x97a   :  { %1320 = vrcp.f32 %v543_v30 }
 0x984   :  { %v1321_v32 = vpop.eup %1320 }
 0x985   :  { %v546_v33 = vsel %vm1483_vm5, %v1319_v31, %v1321_v32 }
 0x986   :  { %552 = vrot.lane.b32.xlu0 %v546_v33, %s1386_s3  ;;  %v550_v37 = vmul.f32 %v548_v36, %v546_v33 }
 0x9f8   :  { %v553_v34 = vpop.permute.xlu0 %552 }
 0x9f9   :  { %v555_v35 = vmul.f32 %v553_v34, %v546_v33 }
 0x9fb   :  { %557 = vrot.lane.b32.xlu1 %v555_v35, %s1387_s17 }
 0xa6d   :  { %v558_v16 = vpop.permute.xlu1 %557 }
 0xa6e   :  { %v560_v38 = vadd.f32 %v558_v16, %v550_v37 }
 0xa70   :  { %1322 = vtanh.f32 %v560_v38  ;;  %v653_v55 = vrot.slane %v560_v38, 6 }
 0xa7a   :  { %v1323_v39 = vpop.eup %1322 }
 0xa7b   :  { %563 = vrot.lane.b32.xlu0 %v1323_v39, %s1386_s3 }
 0xaed   :  { %v564_v40 = vpop.permute.xlu0 %563 }
 0xaee   :  { %v566_v41 = vmul.f32 %v564_v40, %v546_v33 }
 0xaf0   :  { %v568_v42 = vrot.slane %v566_v41, 6 }
 0xaf2   :  { %569 = vrot.lane.b32.xlu1 %v568_v42, %s1387_s17 }
 0xb64   :  { %v570_v43 = vpop.permute.xlu1 %569 }
 0xb65   :  { %1199 = vmatmul.mubr.msk.f32.vlgmr.msra.gmra.mrb[4].mxu1 %vm144_vm6, %v570_v43 }
 0xb66   :  { %1272 = vmatpush3.bf16.msra.mxu1 %v1446_v6  ;;  %1220 = vmatprep.mubr.msk.f32.mxu1 %vm1384_vm0, %v1385_v2 }
 0xb67   :  { %1273 = vmatprep.subr.bf16.mxu1 %v1383_v1 }
 0xb6a   :  { %1275 = vmatpush3.bf16.msra.mxu1 %v1455_v11 }
 0xc38   :  { %v639_v44 = vpop.f32.mrb[4].mxu1 }
 0xc39   :  { %v643_v45 = vadd.f32 %v639_v44, %v1477_v14  ;;  %v1200_v46 = vpop.f32.mrb[5].mxu1 }
 0xc3b   :  { %v1090_v47 = vmul.f32 -1.442695, %v643_v45 }
 0xc3d   :  { %1324 = vpow2.f32 %v1090_v47 }
 0xc3e   :  { %1326 = vtanh.f32 %v643_v45 }
 0xc47   :  { %v1325_v48 = vpop.eup %1324 }
 0xc48   :  { %v648_v49 = vadd.f32 1.0, %v1325_v48  ;;  %v1327_v50 = vpop.eup %1326 }
 0xc4a   :  { %1328 = vrcp.f32 %v648_v49 }
 0xc54   :  { %v1329_v51 = vpop.eup %1328 }
 0xc55   :  { %v651_v52 = vsel %vm1483_vm5, %v1327_v50, %v1329_v51 }
 0xc56   :  { %657 = vrot.lane.b32.xlu0 %v651_v52, %s1386_s3  ;;  %v655_v56 = vmul.f32 %v653_v55, %v651_v52 }
 0xcc8   :  { %v658_v53 = vpop.permute.xlu0 %657 }
 0xcc9   :  { %v660_v54 = vmul.f32 %v658_v53, %v651_v52 }
 0xccb   :  { %662 = vrot.lane.b32.xlu1 %v660_v54, %s1387_s17 }
 0xd3d   :  { %v663_v57 = vpop.permute.xlu1 %662 }
 0xd3e   :  { %v665_v58 = vadd.f32 %v663_v57, %v655_v56 }
 0xd40   :  { %1330 = vtanh.f32 %v665_v58  ;;  %v760_v10 = vrot.slane %v665_v58, 6 }
 0xd4a   :  { %v1331_v59 = vpop.eup %1330 }
 0xd4b   :  { %668 = vrot.lane.b32.xlu0 %v1331_v59, %s1386_s3 }
 0xdbd   :  { %v669_v60 = vpop.permute.xlu0 %668 }
 0xdbe   :  { %v671_v61 = vmul.f32 %v669_v60, %v651_v52 }
 0xdc0   :  { %673 = vrot.lane.b32.xlu1 %v671_v61, %s1387_s17  ;;  %v998_v61 = vunpack.c.l.s4 %v1389_v25 }
 0xe32   :  { %v674_v62 = vpop.permute.xlu1 %673 }
 0xe33   :  { %1210 = vmatmul.mubr.msk.f32.vlgmr.msra.gmra.mrb[6].mxu0 %vm144_vm6, %v674_v62  ;;  %v999_v62 = vunpack.c.0.s8 %v998_v61 }
 0xe34   :  { %1278 = vmatpush3.bf16.msra.mxu0 %v1446_v6  ;;  %1231 = vmatprep.mubr.msk.f32.mxu0 %vm1384_vm0, %v1385_v2 }
 0xe35   :  { %1279 = vmatprep.subr.bf16.mxu0 %v1383_v1 }
 0xe38   :  { %1281 = vmatpush3.bf16.msra.mxu0 %v1455_v11 }
 0xf06   :  { %v743_v63 = vpop.f32.mrb[6].mxu0 }
 0xf07   :  { %v748_v0 = vrot.slane %v743_v63, 6  ;;  %v1211_v3 = vpop.f32.mrb[7].mxu0  ;;  %v1001_v63 = vshrl.u32 %v139_v22, 7 }
 0xf09   :  { %v750_v4 = vadd.f32 %v748_v0, %v1477_v14  ;;  %v1002_v3 = vsub.s32 %v999_v62, %v1001_v63 }
 0xf0b   :  { %v1092_v5 = vmul.f32 -1.442695, %v750_v4 }
 0xf0d   :  { %1332 = vpow2.f32 %v1092_v5 }
 0xf0e   :  { %1334 = vtanh.f32 %v750_v4 }
 0xf17   :  { %v1333_v7 = vpop.eup %1332 }
 0xf18   :  { %v755_v8 = vadd.f32 1.0, %v1333_v7  ;;  %v1335_v9 = vpop.eup %1334 }
 0xf1a   :  { %1336 = vrcp.f32 %v755_v8 }
 0xf24   :  { %v1337_v6 = vpop.eup %1336 }
 0xf25   :  { %v758_v2 = vsel %vm1483_vm5, %v1335_v9, %v1337_v6 }
 0xf26   :  { %764 = vrot.lane.b32.xlu0 %v758_v2, %s1386_s3  ;;  %v762_v12 = vmul.f32 %v760_v10, %v758_v2 }
 0xf98   :  { %v765_v1 = vpop.permute.xlu0 %764 }
 0xf99   :  { %v767_v11 = vmul.f32 %v765_v1, %v758_v2 }
 0xf9b   :  { %769 = vrot.lane.b32.xlu1 %v767_v11, %s1387_s17 }
0x100d   :  { %v770_v13 = vpop.permute.xlu1 %769 }
0x100e   :  { %v772_v15 = vadd.f32 %v770_v13, %v762_v12 }
0x1010   :  { %1338 = vtanh.f32 %v772_v15  ;;  %v868_v36 = vrot.slane %v772_v15, 6 }
0x101a   :  { %v1339_v17 = vpop.eup %1338 }
0x101b   :  { %775 = vrot.lane.b32.xlu0 %v1339_v17, %s1386_s3 }
0x108d   :  { %v776_v18 = vpop.permute.xlu0 %775 }
0x108e   :  { %v778_v19 = vmul.f32 %v776_v18, %v758_v2  ;;  %v1034_v2 = vsub.s32 0, %v1001_v63 }
0x1090   :  { %v780_v20 = vrot.slane %v778_v19, 2 }
0x1092   :  { %781 = vrot.lane.b32.xlu1 %v780_v20, %s1387_s17 }
0x1104   :  { %v782_v21 = vpop.permute.xlu1 %781 }
0x1105   :  { %1221 = vmatmul.mubr.msk.f32.vlgmr.msra.gmra.mrb[6].mxu1 %vm144_vm6, %v782_v21  ;;  %v1097_v21 = vld [vmem:[#allocation2] ss:$0 sm:$0xff] }
0x11d8   :  { %v851_v23 = vpop.f32.mrb[6].mxu1 }
0x11d9   :  { %v856_v24 = vrot.slane %v851_v23, 4  ;;  %v1222_v26 = vpop.f32.mrb[7].mxu1 }
0x11db   :  { %v858_v27 = vadd.f32 %v856_v24, %v1477_v14 }
0x11dd   :  { %v1094_v28 = vmul.f32 -1.442695, %v858_v27 }
0x11df   :  { %1340 = vpow2.f32 %v1094_v28 }
0x11e0   :  { %1342 = vtanh.f32 %v858_v27 }
0x11e9   :  { %v1341_v29 = vpop.eup %1340 }
0x11ea   :  { %v863_v30 = vadd.f32 1.0, %v1341_v29  ;;  %v1343_v31 = vpop.eup %1342 }
0x11ec   :  { %1344 = vrcp.f32 %v863_v30 }
0x11f6   :  { %v1345_v32 = vpop.eup %1344 }
0x11f7   :  { %v866_v33 = vsel %vm1483_vm5, %v1343_v31, %v1345_v32 }
0x11f8   :  { %872 = vrot.lane.b32.xlu0 %v866_v33, %s1386_s3  ;;  %v870_v37 = vmul.f32 %v868_v36, %v866_v33 }
0x126a   :  { %v873_v34 = vpop.permute.xlu0 %872 }
0x126b   :  { %v875_v35 = vmul.f32 %v873_v34, %v866_v33 }
0x126d   :  { %877 = vrot.lane.b32.xlu1 %v875_v35, %s1387_s17 }
0x12df   :  { %v878_v16 = vpop.permute.xlu1 %877 }
0x12e0   :  { %v880_v38 = vadd.f32 %v878_v16, %v870_v37 }
0x12e2   :  { %1346 = vtanh.f32 %v880_v38  ;;  %v976_v56 = vrot.slane %v880_v38, 6 }
0x12ec   :  { %v1347_v39 = vpop.eup %1346 }
0x12ed   :  { %883 = vrot.lane.b32.xlu0 %v1347_v39, %s1386_s3 }
0x135f   :  { %v884_v40 = vpop.permute.xlu0 %883 }
0x1360   :  { %v886_v41 = vmul.f32 %v884_v40, %v866_v33 }
0x1362   :  { %v888_v42 = vrot.slane %v886_v41, 4 }
0x1364   :  { %889 = vrot.lane.b32.xlu1 %v888_v42, %s1387_s17 }
0x13d6   :  { %v890_v43 = vpop.permute.xlu1 %889 }
0x13d7   :  { %1232 = vmatmul.mubr.msk.f32.vlgmr.msra.gmra.mrb[8].mxu0 %vm144_vm6, %v890_v43 }
0x14aa   :  { %v959_v44 = vpop.f32.mrb[8].mxu0 }
0x14ab   :  { %v964_v45 = vrot.slane %v959_v44, 2  ;;  %v1233_v46 = vpop.f32.mrb[9].mxu0 }
0x14ad   :  { %v966_v47 = vadd.f32 %v964_v45, %v1477_v14  ;;  %v1023_v14 = vld [vmem:[%s1589_s4] sm:$0x1] }
0x14af   :  { %v1096_v48 = vmul.f32 -1.442695, %v966_v47 }
0x14b1   :  { %1348 = vpow2.f32 %v1096_v48 }
0x14b2   :  { %1350 = vtanh.f32 %v966_v47 }
0x14bb   :  { %v1349_v49 = vpop.eup %1348 }
0x14bc   :  { %v971_v50 = vadd.f32 1.0, %v1349_v49  ;;  %v1351_v51 = vpop.eup %1350 }
0x14be   :  { %1352 = vrcp.f32 %v971_v50 }
0x14c8   :  { %v1353_v52 = vpop.eup %1352 }
0x14c9   :  { %v974_v53 = vsel %vm1483_vm5, %v1351_v51, %v1353_v52 }
0x14ca   :  { %980 = vrot.lane.b32.xlu0 %v974_v53, %s1386_s3  ;;  %v978_v57 = vmul.f32 %v976_v56, %v974_v53 }
0x153c   :  { %v981_v54 = vpop.permute.xlu0 %980 }
0x153d   :  { %v983_v55 = vmul.f32 %v981_v54, %v974_v53 }
0x153f   :  { %985 = vrot.lane.b32.xlu1 %v983_v55, %s1387_s17 }
0x1543   :  { %1025 = vrot.lane.b32.xlu1 %v1023_v14, %s1388_s20 }
0x15b1   :  { %v986_v58 = vpop.permute.xlu1 %985 }
0x15b2   :  { %v988_v59 = vadd.f32 %v986_v58, %v978_v57 }
0x15b4   :  { %1354 = vtanh.f32 %v988_v59 }
0x15b5   :  { %v1026_v6 = vpop.permute.xlu1 %1025 }
0x15be   :  { %v1355_v60 = vpop.eup %1354 }
0x15bf   :  { %991 = vrot.lane.b32.xlu0 %v1355_v60, %s1386_s3 }
0x1631   :  { %v992_v0 = vpop.permute.xlu0 %991 }
0x1632   :  { %v994_v4 = vmul.f32 %v992_v0, %v974_v53 }
0x1634   :  { %v996_v5 = vcombine.high %v994_v4, %v994_v4 }
0x1636   :  { %v1003_v7 = vrot.slane %v996_v5, %v1002_v3 }
0x1638   :  { %v1004_v8 = vcombine.high %v1003_v7, %v1003_v7  ;;  %v1011_v9 = vrot.slane %v1003_v7, %v1002_v3 }
0x163a   :  { %v1018_v1 = vrot.slane %v1004_v8, %v1002_v3  ;;  %v1019_v11 = vcombine.high %v1011_v9, %v1011_v9 }
0x163c   :  { %v1020_v10 = vcombine.high %v1018_v1, %v1018_v1  ;;  %v1028_v12 = vmul.f32 %v1026_v6, %v1019_v11 }
0x163e   :  { %v1029_v13 = vmul.f32 %v1026_v6, %v1020_v10  ;;  %v1035_v15 = vrot.slane %v1028_v12, %v1034_v2 }
0x1640   :  { %v1039_v17 = vrot.slane %v1029_v13, %v1034_v2  ;;  %1040 = vrot.lane.b32.xlu1 %v1035_v15, %s1387_s17 }
0x1642   :  { %1042 = vrot.lane.b32.xlu0 %v1039_v17, %s1387_s17 }
0x16b2   :  { %v1041_v22 = vpop.permute.xlu1 %1040 }
0x16b3   :  { %v1047_v18 = vsel %vm1046_vm7, %v1041_v22, 0.0 }
0x16b4   :  { %1048 = vadd.xlane.f32.xlu1 %v1047_v18  ;;  %v1043_v19 = vpop.permute.xlu0 %1042 }
0x16b5   :  { %v1050_v20 = vsel %vm1046_vm7, %v1043_v19, 0.0 }
0x16b6   :  { %1051 = vadd.xlane.f32.xlu0 %v1050_v20 }
0x16cc   :  { %1060 = vbcast.lane.b32.xlu0 %v1097_v21, 256 }
0x1741   :  { %v1049_v27 = vpop.xlane.xlu1 %1048 }
0x1743   :  { %v1052_v23 = vpop.xlane.xlu0 %1051 }
0x1747   :  { %v1061_v24 = vpop.permute.xlu0 %1060 }
0x1748   :  { %v1064_v26 = vadd.f32 %v1061_v24, %v1052_v23  ;;  %v1063_v28 = vadd.f32 %v1061_v24, %v1049_v27 }
0x174a   :  { %v1067_v29 = vrot.slane %v1064_v26, 7 }
0x174c   :  { %v1069_v30 = vsel %vm1068_vm8, %v1067_v29, %v1063_v28 }
0x174d   :  { %1072 = vst.msk [vmem:[%s1591_s6] sm:$0x3] %vm1071_vm9, %v1069_v30 }
0x174e   :  { %1077 = vsyncpa [#allocation4], 1 }

</bundles_post_ra>
